<compile_context>
chip_gen: v7x
topology: tpu7x:2x2x1
jax: 0.10.0
libtpu: 0.0.40
codegen_flags: <defaults>
</compile_context>

<pallas_src>
import jax
import jax.numpy as jnp
from jax.experimental import pallas as pl
from jax.experimental.pallas import tpu as pltpu


# Folded constants:  (2 * (x / 255) - 1) * 1024  ==  x * (2048/255) - 1024
_SCALE = 2.0 * 1024.0 / 255.0
_BIAS = -1024.0


def _normalize_kernel(x_ref, o_ref):
    # Elementwise fused scale+bias in float32 (cast happens in-VMEM).
    x = x_ref[...].astype(jnp.float32)
    o_ref[...] = x * _SCALE + _BIAS


def custom_normalize(img: jax.Array) -> jax.Array:
    """Applies (2 * (img/255) - 1) * 1024 elementwise, returning float32."""
    orig_shape = img.shape
    n = img.size

    # Widest lane-dense width (multiple of 128) that divides the element
    # count exactly -> unmasked vector stores, no wrapper padding copy.
    width = None
    for w in (2048, 1024, 512, 256, 128):
        if n % w == 0:
            width = w
            break

    flat = img.reshape(-1)
    pad = 0
    if width is None:
        # Rare fallback for odd element counts: pad to a 128-lane multiple.
        width = 128
        pad = (-n) % width
        flat = jnp.pad(flat, (0, pad))

    rows = flat.size // width
    x2d = flat.reshape(rows, width)

    # Row tile: aim for ~2 MiB of f32 output per block (sweet spot of the
    # measured tiling sweep), rounded to a multiple of 32 so it also aligns
    # with uint8 sublane packing.  Small inputs use the full row extent
    # (block == array extent is always legal).
    target_rows = max(32, min(512, (2 << 20) // (4 * width)))
    target_rows = (target_rows // 32) * 32
    tile_rows = min(target_rows, rows)
    grid = (pl.cdiv(rows, tile_rows),)

    itemsize = jnp.dtype(img.dtype).itemsize
    cost = pl.CostEstimate(
        flops=2 * n,
        transcendentals=0,
        bytes_accessed=n * (itemsize + 4),
    )

    out2d = pl.pallas_call(
        _normalize_kernel,
        out_shape=jax.ShapeDtypeStruct((rows, width), jnp.float32),
        grid_spec=pltpu.PrefetchScalarGridSpec(
            num_scalar_prefetch=0,
            grid=grid,
            in_specs=[pl.BlockSpec((tile_rows, width), lambda i: (i, 0))],
            out_specs=pl.BlockSpec((tile_rows, width), lambda i: (i, 0)),
        ),
        compiler_params=pltpu.CompilerParams(
            dimension_semantics=("parallel",),
        ),
        cost_estimate=cost,
    )(x2d)

    out_flat = out2d.reshape(-1)
    if pad:
        out_flat = out_flat[:n]
    return out_flat.reshape(orig_shape)


if __name__ == "__main__":
    key = jax.random.PRNGKey(0)
    # NCHW image-like input; values in [0, 255] like a uint8 image.
    x_u8 = jax.random.randint(
        key, (2, 4, 16, 16), 0, 256, dtype=jnp.int32
    ).astype(jnp.uint8)

    out = jax.block_until_ready(custom_normalize(x_u8))

    # Reference check (plain JAX).
    ref = (2.0 * (x_u8.astype(jnp.float32) / 255.0) - 1.0) * 1024.0
    assert out.shape == x_u8.shape
    assert out.dtype == jnp.float32
    assert jnp.allclose(out, ref, atol=1e-4, rtol=1e-6)

    print("KERNEL_OK")
</pallas_src>

<mosaic_0001>
module attributes {stable_mosaic.version = 11 : i64} {
  func.func @_normalize_kernel(%arg0: i32, %arg1: memref<1x2048xi8, #tpu.memory_space<vmem>>, %arg2: memref<1x2048xf32, #tpu.memory_space<vmem>>) attributes {dimension_semantics = [#tpu.dimension_semantics<parallel>], iteration_bounds = array<i64: 1>, scalar_prefetch = 0 : i64, scratch_operands = 0 : i64, tpu.core_type = #tpu.core_type<tc>, window_params = [{transform_indices = @transform_0, window_bounds = array<i64: 1, 2048>}, {transform_indices = @transform_1, window_bounds = array<i64: 1, 2048>}]} {
    %c0 = arith.constant 0 : index
    %c0_0 = arith.constant 0 : index
    %0 = vector.load %arg1[%c0, %c0_0] : memref<1x2048xi8, #tpu.memory_space<vmem>>, vector<1x2048xi8>
    %1 = arith.uitofp %0 : vector<1x2048xi8> to vector<1x2048xf32>
    %cst = arith.constant 8.03137302 : f32
    %2 = vector.broadcast %cst : f32 to vector<1x2048xf32>
    %3 = arith.mulf %1, %2 : vector<1x2048xf32>
    %cst_1 = arith.constant -1.024000e+03 : f32
    %4 = vector.broadcast %cst_1 : f32 to vector<1x2048xf32>
    %5 = arith.addf %3, %4 : vector<1x2048xf32>
    %c0_2 = arith.constant 0 : index
    %c0_3 = arith.constant 0 : index
    %6 = vector.load %arg2[%c0_2, %c0_3] : memref<1x2048xf32, #tpu.memory_space<vmem>>, vector<1x2048xf32>
    tpu.vector_store %arg2[%c0_2, %c0_3], %5 {strides = array<i32>} : memref<1x2048xf32, #tpu.memory_space<vmem>>, vector<1x2048xf32>,
    return
  }
  func.func @transform_0(%arg0: i32) -> (i32, i32) {
    %c0_i32 = arith.constant 0 : i32
    %c0_i32_0 = arith.constant 0 : i32
    return %arg0, %c0_i32 : i32, i32
  }
  func.func @transform_1(%arg0: i32) -> (i32, i32) {
    %c0_i32 = arith.constant 0 : i32
    %c0_i32_0 = arith.constant 0 : i32
    return %arg0, %c0_i32 : i32, i32
  }
}

</mosaic_0001>

<bundles_post_ra>
// kernel: tpu_custom_call.1
= control target key start
LH: loop header
LB: loop body
LE: loop exit
PB: predicated region body
PF: predicated region fallthrough
CT: control target
= control target key end

     0   :  { %6 = vsyncpa [#allocation3], 0  ;;  %s268_s0 = inlined_call_operand.hbm [shape: u8[1,2048], index: 0, kind: input, shape index: {}]   ;;  %s269_s1 = inlined_call_operand.hbm [shape: f32[1,2048], index: 1, kind: output, shape index: {}]  }
   0x1   :  { %7 = vsyncpa [#allocation4], 0  ;;  %s231_s6 = smov [#allocation2]   ;;  %s183_s10 = scalar_lea.hbm %s268_s0, 256 }
   0x2   :  { %s14_s7 = sshll.u32 %s231_s6, 4  ;;  %p184_p0 = scmp.ne.s32.totalorder %s268_s0, %s183_s10  ;;  %s15_s7 = int_to_ptr.vmem [resolvable:$true] %s14_s7 }
   0x3   :  { %p187_p1 = scmp.lt.u32.totalorder %s183_s10, %s268_s0 }
   0x5   :  { %p189_p2 = pnand %p187_p1, %p184_p0 }
   0x7   :  { %192 = shalt.err (!%p189_p2)
}
   0x8   :  { %s193_s15 = scalar_lea.vmem %s15_s7, 256  ;;  %p198_p4 = scmp.lt.s32.totalorder %s15_s7, %s15_s7 }
   0x9   :  { %p194_p3 = scmp.ne.s32.totalorder %s15_s7, %s193_s15  ;;  %p199_p5 = scmp.lt.s32.totalorder %s193_s15, %s193_s15 }
   0xb   :  { %p200_p6 = por %p199_p5, %p198_p4 }
   0xd   :  { %p201_p7 = pnand %p200_p6, %p194_p3 }
   0xf   :  { %204 = shalt.err (!%p201_p7)
}
  0x10   :  { %17 = dma.hbm_to_vmem [thread:$0]  %s268_s0, 256, %s15_s7, [#allocation3]  }
  0x11   :  { %227 = dma.done.wait [#allocation3], 256  }
  0x12   :  { %228 = vsyncadd [#allocation3], 4294967040  ;;  %v232_v0 = vmov 1966171168   ;;  %v74_v2 = vlaneseq  ;;  %v21_v3 = vld [vmem:[#allocation2] sm:$0xff]  ;;  %v22_v6 = vld [vmem:[#allocation2 + $0x8] sm:$0xff] }
  0x13   :  { %v72_v1 = vunpack.c.l.s4 %v232_v0  ;;  %v23_v7 = vunpack.c.0.s8 %v21_v3  ;;  %v24_v8 = vunpack.c.1.s8 %v21_v3  ;;  %v25_v9 = vunpack.c.2.s8 %v21_v3  ;;  %s233_s0 = smov [#allocation5]  }
  0x14   :  { %v75_v5 = vshrl.u32 %v74_v2, 7  ;;  %v26_v10 = vunpack.c.3.s8 %v21_v3  ;;  %v27_v11 = vunpack.c.0.s8 %v22_v6  ;;  %v28_v12 = vunpack.c.1.s8 %v22_v6  ;;  %s171_s18 = sshll.u32 %s233_s0, 4  ;;  %s172_s18 = int_to_ptr.vmem [resolvable:$true] %s171_s18 }
  0x15   :  { %v73_v4 = vunpack.c.0.s8 %v72_v1  ;;  %v29_v13 = vunpack.c.2.s8 %v22_v6  ;;  %v30_v14 = vunpack.c.3.s8 %v22_v6  ;;  %v31_v15 = vand.u32 255, %v23_v7  ;;  %s205_s19 = scalar_lea.vmem %s172_s18, 256  ;;  %p210_p9 = scmp.lt.s32.totalorder %s172_s18, %s172_s18 }
  0x16   :  { %v32_v16 = vand.u32 255, %v24_v8  ;;  %v33_v17 = vand.u32 255, %v25_v9  ;;  %v34_v18 = vand.u32 255, %v26_v10  ;;  %v35_v19 = vand.u32 255, %v27_v11  ;;  %p206_p8 = scmp.ne.s32.totalorder %s172_s18, %s205_s19  ;;  %p211_p10 = scmp.lt.s32.totalorder %s205_s19, %s205_s19 }
  0x17   :  { %v36_v20 = vand.u32 255, %v28_v12  ;;  %v37_v21 = vand.u32 255, %v29_v13  ;;  %v38_v22 = vand.u32 255, %v30_v14  ;;  %v39_v23 = vcvt.s32.f32 %v31_v15 }
  0x18   :  { %v40_v24 = vcvt.s32.f32 %v32_v16  ;;  %v41_v25 = vcvt.s32.f32 %v33_v17  ;;  %v42_v26 = vcvt.s32.f32 %v34_v18  ;;  %v43_v27 = vcvt.s32.f32 %v35_v19  ;;  %p212_p11 = por %p211_p10, %p210_p9 }
  0x19   :  { %v44_v28 = vcvt.s32.f32 %v36_v20  ;;  %v45_v29 = vcvt.s32.f32 %v37_v21  ;;  %v46_v30 = vcvt.s32.f32 %v38_v22  ;;  %v47_v31 = vmul.f32 8.031373, %v39_v23 }
  0x1a   :  { %v48_v32 = vmul.f32 8.031373, %v40_v24  ;;  %v49_v33 = vmul.f32 8.031373, %v41_v25  ;;  %v76_v34 = vsub.s32 %v73_v4, %v75_v5  ;;  %v50_v35 = vmul.f32 8.031373, %v42_v26  ;;  %p213_p12 = pnand %p212_p11, %p206_p8 }
  0x1b   :  { %v51_v36 = vmul.f32 8.031373, %v43_v27  ;;  %v52_v37 = vmul.f32 8.031373, %v44_v28  ;;  %v55_v38 = vadd.f32 -1024.0, %v47_v31 }
  0x1c   :  { %v56_v39 = vadd.f32 -1024.0, %v48_v32  ;;  %v57_v40 = vadd.f32 -1024.0, %v49_v33  ;;  %v53_v41 = vmul.f32 8.031373, %v45_v29  ;;  %v58_v42 = vadd.f32 -1024.0, %v50_v35 }
  0x1d   :  { %v54_v43 = vmul.f32 8.031373, %v46_v30  ;;  %v59_v44 = vadd.f32 -1024.0, %v51_v36  ;;  %v60_v45 = vadd.f32 -1024.0, %v52_v37  ;;  %v77_v46 = vrot.slane %v55_v38, %v76_v34 }
  0x1e   :  { %v84_v47 = vrot.slane %v56_v39, %v76_v34  ;;  %v91_v48 = vrot.slane %v57_v40, %v76_v34  ;;  %v61_v49 = vadd.f32 -1024.0, %v53_v41  ;;  %v98_v50 = vrot.slane %v58_v42, %v76_v34 }
  0x1f   :  { %v62_v51 = vadd.f32 -1024.0, %v54_v43  ;;  %v122_v52 = vrot.slane %v59_v44, %v76_v34  ;;  %v129_v53 = vrot.slane %v60_v45, %v76_v34 }
  0x20   :  { %v99_v54 = vcombine.low %v77_v46, %v84_v47  ;;  %v136_v55 = vrot.slane %v61_v49, %v76_v34  ;;  %v100_v56 = vcombine.low %v91_v48, %v98_v50 }
  0x21   :  { %v143_v57 = vrot.slane %v62_v51, %v76_v34  ;;  %v144_v58 = vcombine.low %v122_v52, %v129_v53 }
  0x22   :  { %v107_v59 = vrot.slane %v99_v54, %v76_v34  ;;  %v114_v60 = vrot.slane %v100_v56, %v76_v34 }
  0x23   :  { %v145_v61 = vcombine.low %v136_v55, %v143_v57  ;;  %v152_v62 = vrot.slane %v144_v58, %v76_v34 }
  0x24   :  { %v115_v63 = vcombine.low %v107_v59, %v114_v60 }
  0x25   :  { %v159_v0 = vrot.slane %v145_v61, %v76_v34 }
  0x26   :  { %163 = vst [vmem:[#allocation5] sm:$0xff] %v115_v63 }
  0x27   :  { %v160_v1 = vcombine.low %v152_v62, %v159_v0 }
  0x29   :  { %164 = vst [vmem:[#allocation5 + $0x8] sm:$0xff] %v160_v1 }
  0x2a   :  { %216 = shalt.err (!%p213_p12)
}
  0x2b   :  { %s217_s22 = scalar_lea.hbm %s269_s1, 256 }
  0x2c   :  { %p218_p13 = scmp.ne.s32.totalorder %s269_s1, %s217_s22  ;;  %p221_p0 = scmp.lt.u32.totalorder %s217_s22, %s269_s1 }
  0x2e   :  { %p223_p1 = pnand %p221_p0, %p218_p13 }
  0x30   :  { %226 = shalt.err (!%p223_p1)
}
  0x31   :  { %174 = dma.vmem_to_hbm [thread:$0]  %s172_s18, 256, %s269_s1, [#allocation4]  }
  0x32   :  { %229 = dma.done.wait [#allocation4], 256  }
  0x33   :  { %230 = vsyncadd [#allocation4], 4294967040 }
  0x34   :  { %178 = vsyncpa [#allocation3], 1 }
  0x35   :  { %179 = vsyncpa [#allocation4], 1 }

</bundles_post_ra>
